<compile_context>
chip_gen: v6e
topology: v6e:2x2x1
jax: 0.10.0
libtpu: 0.0.40
codegen_flags: <defaults>
</compile_context>

<pallas_src>
import functools

import jax
import jax.numpy as jnp
from jax import lax
from jax.experimental import pallas as pl
from jax.experimental.pallas import tpu as pltpu

EPS = 1e-5
LANE = 128


def _round_up(x, m):
    return (x + m - 1) // m * m


def _make_fused_kernel(n, eps):
    """Builds the fused kernel for a fixed, compile-time layer count `n`."""

    def kernel(*refs):
        # refs = (x, w0, g0, b0, ..., w{n-1}, g{n-1}, b{n-1}, out)
        x_ref = refs[0]
        o_ref = refs[-1]
        p = refs[1:-1]

        x = x_ref[...]                          # (B, in_pad) f32
        inv_b = 1.0 / x.shape[0]                # TRUE batch size (static)
        h = x
        for i in range(n):                      # static python unroll
            w = p[3 * i][...]                   # (in_pad_i, out_pad_i) bf16
            g = p[3 * i + 1][...]               # (1, out_pad_i) f32
            b = p[3 * i + 2][...]               # (1, out_pad_i) f32

            # bf16 operands into the MXU, f32 accumulation.
            y = jnp.dot(h.astype(jnp.bfloat16), w,
                        preferred_element_type=jnp.float32)

            # Single-pass batch statistics in f32; keep the two sublane
            # reductions adjacent so they pipeline through the XLU.
            s = jnp.sum(y, axis=0, keepdims=True)
            ss = jnp.sum(y * y, axis=0, keepdims=True)
            mean = s * inv_b
            var = jnp.maximum(ss * inv_b - mean * mean, 0.0)   # biased var

            # BN folded into one per-feature affine: the rsqrt stays on the
            # cheap (1, F) row, the (B, F) tile only sees mul + add (+ relu).
            a = g * lax.rsqrt(var + eps)
            c = b - mean * a
            h = y * a + c
            if i != n - 1:
                h = jnp.maximum(h, 0.0)

        # Shortcut slice folded into the epilogue (static lane slice).
        shortcut = x[:, : o_ref.shape[1]]
        o_ref[...] = jnp.maximum(h + shortcut, 0.0).astype(o_ref.dtype)

    return kernel


@functools.lru_cache(maxsize=None)
def _cached_kernel(n, eps):
    return _make_fused_kernel(n, eps)


def multi_layer_proj_shortcut(x, weights, gammas, betas):
    """x: (B, in_feature) f32.

    weights[i]: (in_f_i, out_f_i)  -- nn.Linear weight already transposed.
    gammas[i]/betas[i]: (out_f_i,) BatchNorm affine params.
    """
    n = len(weights)
    B, in_feature = x.shape
    out_feature = int(weights[-1].shape[1])

    # ---- lane-dense padding of every feature axis to a multiple of 128 -----
    in_pad = _round_up(in_feature, LANE)
    layer_dims = [
        (_round_up(int(w.shape[0]), LANE), _round_up(int(w.shape[1]), LANE))
        for w in weights
    ]
    out_pad = layer_dims[-1][1]

    x_p = jnp.pad(x.astype(jnp.float32), ((0, 0), (0, in_pad - in_feature)))

    inputs = [x_p]
    for (w, g, b), (ip, op) in zip(zip(weights, gammas, betas), layer_dims):
        # Weights shipped as bf16 (zero-padded) so the cast is not a per-layer
        # VALU pass inside the kernel.  Padded gamma/beta lanes are 0, which
        # keeps padded output lanes exactly 0 through BN.
        w_p = jnp.pad(
            w.astype(jnp.bfloat16),
            ((0, ip - int(w.shape[0])), (0, op - int(w.shape[1]))),
        )
        g_p = jnp.pad(jnp.reshape(g, (1, -1)).astype(jnp.float32),
                      ((0, 0), (0, op - int(g.size))))
        b_p = jnp.pad(jnp.reshape(b, (1, -1)).astype(jnp.float32),
                      ((0, 0), (0, op - int(b.size))))
        inputs += [w_p, g_p, b_p]

    kernel = _cached_kernel(n, EPS)

    # Everything lives whole in VMEM (single program, no grid).
    vmem = pltpu.MemorySpace.VMEM
    in_specs = [pl.BlockSpec(memory_space=vmem) for _ in inputs]
    out_specs = pl.BlockSpec(memory_space=vmem)

    # ---- advisory cost estimate for XLA scheduling --------------------------
    flops = 0
    transcendentals = 0
    for ip, op in layer_dims:
        flops += 2 * B * ip * op + 6 * B * op     # matmul + folded BN/ReLU
        transcendentals += op                     # rsqrt per feature
    bytes_accessed = B * out_pad * 4
    for arr in inputs:
        bytes_accessed += int(arr.size) * int(arr.dtype.itemsize)

    # ---- VMEM budget derived from the actual resident footprint -------------
    footprint = int(x_p.size) * 4 + B * out_pad * 4
    for ip, op in layer_dims:
        footprint += ip * op * 2 + 2 * op * 4     # bf16 weights + f32 gamma/beta
        footprint += 2 * B * op * 4               # y and h live in f32
    try:
        vmem_cap = int(pltpu.get_tpu_info().vmem_capacity_bytes)
    except Exception:
        vmem_cap = 64 * 1024 * 1024               # v7x per-TC floor
    vmem_limit = int(min(max(4 * footprint, 16 * 1024 * 1024),
                         vmem_cap - 8 * 1024 * 1024))

    out_p = pl.pallas_call(
        kernel,
        out_shape=jax.ShapeDtypeStruct((B, out_pad), jnp.float32),
        in_specs=in_specs,
        out_specs=out_specs,
        cost_estimate=pl.CostEstimate(
            flops=flops,
            transcendentals=transcendentals,
            bytes_accessed=int(bytes_accessed),
        ),
        compiler_params=pltpu.CompilerParams(vmem_limit_bytes=vmem_limit),
    )(*inputs)

    # Un-pad the lane-dense output outside the kernel.
    return out_p[:, :out_feature]


# ---------------------------------------------------------------------------
# References
# ---------------------------------------------------------------------------
def _reference_f32(x, weights, gammas, betas):
    """Pure-JAX f32 reference matching the PyTorch module in training mode."""
    n = len(weights)
    out_feature = weights[-1].shape[1]
    h = x
    for i in range(n):
        y = h @ weights[i]
        mean = jnp.mean(y, axis=0, keepdims=True)
        var = jnp.mean((y - mean) ** 2, axis=0, keepdims=True)
        y = (y - mean) / jnp.sqrt(var + EPS) * jnp.reshape(gammas[i], (1, -1)) \
            + jnp.reshape(betas[i], (1, -1))
        if i != n - 1:
            y = jnp.maximum(y, 0.0)
        h = y
    return jnp.maximum(h + x[:, :out_feature], 0.0)


def _reference_mxu(x, weights, gammas, betas):
    """Same math with the kernel's bf16-in / f32-accumulate matmul numerics."""
    n = len(weights)
    out_feature = weights[-1].shape[1]
    h = x
    for i in range(n):
        y = jnp.dot(h.astype(jnp.bfloat16), weights[i].astype(jnp.bfloat16),
                    preferred_element_type=jnp.float32)
        mean = jnp.mean(y, axis=0, keepdims=True)
        var = jnp.mean((y - mean) ** 2, axis=0, keepdims=True)
        y = (y - mean) / jnp.sqrt(var + EPS) * jnp.reshape(gammas[i], (1, -1)) \
            + jnp.reshape(betas[i], (1, -1))
        if i != n - 1:
            y = jnp.maximum(y, 0.0)
        h = y
    return jnp.maximum(h + x[:, :out_feature], 0.0)


if __name__ == "__main__":
    # Small, deterministic setup consistent with the module's __init__.
    n = 2
    B, in_feature, hidden_feature, out_feature = 8, 32, 64, 16

    key = jax.random.PRNGKey(0)
    kx, *kw = jax.random.split(key, n + 1)

    x = jax.random.normal(kx, (B, in_feature), dtype=jnp.float32)

    weights, gammas, betas = [], [], []
    for i in range(n):
        in_f = in_feature if i == 0 else hidden_feature
        out_f = out_feature if i == n - 1 else hidden_feature
        # nn.Linear weight is (out_f, in_f); store transposed as (in_f, out_f).
        w = jax.random.normal(kw[i], (in_f, out_f), dtype=jnp.float32) * (
            1.0 / jnp.sqrt(in_f)
        )
        weights.append(w)
        gammas.append(jnp.ones((out_f,), dtype=jnp.float32))   # BN gamma init
        betas.append(jnp.zeros((out_f,), dtype=jnp.float32))   # BN beta init

    out = multi_layer_proj_shortcut(x, weights, gammas, betas)
    out = jax.block_until_ready(out)
    assert out.shape == (B, out_feature)

    # Tight check vs a reference that mirrors the kernel's bf16-MXU numerics.
    ref_mxu = _reference_mxu(x, weights, gammas, betas)
    assert jnp.allclose(out, ref_mxu, atol=5e-3, rtol=5e-3), \
        "mismatch vs bf16-matmul reference"

    # Looser sanity check vs the pure-f32 PyTorch-style reference (bf16 MXU
    # inputs introduce ~1e-2-level deviations by design; see perf review).
    ref_f32 = _reference_f32(x, weights, gammas, betas)
    assert jnp.allclose(out, ref_f32, atol=1e-1, rtol=1e-1), \
        "mismatch vs f32 reference"

    print("KERNEL_OK")
</pallas_src>

<mosaic_0001>
module attributes {stable_mosaic.version = 11 : i64} {
  func.func @kernel(%arg0: memref<8x128xf32, #tpu.memory_space<vmem>>, %arg1: memref<128x128xbf16, #tpu.memory_space<vmem>>, %arg2: memref<1x128xf32, #tpu.memory_space<vmem>>, %arg3: memref<1x128xf32, #tpu.memory_space<vmem>>, %arg4: memref<128x128xbf16, #tpu.memory_space<vmem>>, %arg5: memref<1x128xf32, #tpu.memory_space<vmem>>, %arg6: memref<1x128xf32, #tpu.memory_space<vmem>>, %arg7: memref<8x128xf32, #tpu.memory_space<vmem>>) attributes {dimension_semantics = [], scalar_prefetch = 0 : i64, scratch_operands = 0 : i64, tpu.core_type = #tpu.core_type<tc>} {
    %c0 = arith.constant 0 : index
    %c0_0 = arith.constant 0 : index
    %0 = vector.load %arg0[%c0, %c0_0] : memref<8x128xf32, #tpu.memory_space<vmem>>, vector<8x128xf32>
    %c0_1 = arith.constant 0 : index
    %c0_2 = arith.constant 0 : index
    %1 = vector.load %arg1[%c0_1, %c0_2] : memref<128x128xbf16, #tpu.memory_space<vmem>>, vector<128x128xbf16>
    %c0_3 = arith.constant 0 : index
    %c0_4 = arith.constant 0 : index
    %2 = vector.load %arg2[%c0_3, %c0_4] : memref<1x128xf32, #tpu.memory_space<vmem>>, vector<1x128xf32>
    %c0_5 = arith.constant 0 : index
    %c0_6 = arith.constant 0 : index
    %3 = vector.load %arg3[%c0_5, %c0_6] : memref<1x128xf32, #tpu.memory_space<vmem>>, vector<1x128xf32>
    %4 = arith.truncf %0 : vector<8x128xf32> to vector<8x128xbf16>
    %cst = arith.constant dense<0.000000e+00> : vector<8x128xf32>
    %5 = tpu.matmul %4, %1, %cst {dimension_numbers = #tpu.dot_dimension_numbers<[1], [0], [0], [1], [0, 0, 1, 1], [], []>} : vector<8x128xbf16>, vector<128x128xbf16>, vector<8x128xf32> -> vector<8x128xf32>
    %cst_7 = arith.constant dense<0.000000e+00> : vector<128xf32>
    %6 = vector.multi_reduction <add>, %5, %cst_7 [0] : vector<8x128xf32> to vector<128xf32>
    %7 = vector.shape_cast %6 : vector<128xf32> to vector<1x128xf32>
    %8 = arith.mulf %5, %5 : vector<8x128xf32>
    %cst_8 = arith.constant dense<0.000000e+00> : vector<128xf32>
    %9 = vector.multi_reduction <add>, %8, %cst_8 [0] : vector<8x128xf32> to vector<128xf32>
    %10 = vector.shape_cast %9 : vector<128xf32> to vector<1x128xf32>
    %cst_9 = arith.constant 1.250000e-01 : f32
    %11 = vector.broadcast %cst_9 : f32 to vector<1x128xf32>
    %12 = arith.mulf %7, %11 : vector<1x128xf32>
    %cst_10 = arith.constant 1.250000e-01 : f32
    %13 = vector.broadcast %cst_10 : f32 to vector<1x128xf32>
    %14 = arith.mulf %10, %13 : vector<1x128xf32>
    %15 = arith.mulf %12, %12 : vector<1x128xf32>
    %16 = arith.subf %14, %15 : vector<1x128xf32>
    %cst_11 = arith.constant 0.000000e+00 : f32
    %17 = vector.broadcast %cst_11 : f32 to vector<1x128xf32>
    %18 = arith.maximumf %16, %17 : vector<1x128xf32>
    %cst_12 = arith.constant 9.99999974E-6 : f32
    %19 = vector.broadcast %cst_12 : f32 to vector<1x128xf32>
    %20 = arith.addf %18, %19 : vector<1x128xf32>
    %21 = math.rsqrt %20 : vector<1x128xf32>
    %22 = arith.mulf %2, %21 : vector<1x128xf32>
    %23 = arith.mulf %12, %22 : vector<1x128xf32>
    %24 = arith.subf %3, %23 : vector<1x128xf32>
    %25 = vector.broadcast %22 : vector<1x128xf32> to vector<8x128xf32>
    %26 = arith.mulf %5, %25 : vector<8x128xf32>
    %27 = vector.broadcast %24 : vector<1x128xf32> to vector<8x128xf32>
    %28 = arith.addf %26, %27 : vector<8x128xf32>
    %cst_13 = arith.constant 0.000000e+00 : f32
    %29 = vector.broadcast %cst_13 : f32 to vector<8x128xf32>
    %30 = arith.maximumf %28, %29 : vector<8x128xf32>
    %c0_14 = arith.constant 0 : index
    %c0_15 = arith.constant 0 : index
    %31 = vector.load %arg4[%c0_14, %c0_15] : memref<128x128xbf16, #tpu.memory_space<vmem>>, vector<128x128xbf16>
    %c0_16 = arith.constant 0 : index
    %c0_17 = arith.constant 0 : index
    %32 = vector.load %arg5[%c0_16, %c0_17] : memref<1x128xf32, #tpu.memory_space<vmem>>, vector<1x128xf32>
    %c0_18 = arith.constant 0 : index
    %c0_19 = arith.constant 0 : index
    %33 = vector.load %arg6[%c0_18, %c0_19] : memref<1x128xf32, #tpu.memory_space<vmem>>, vector<1x128xf32>
    %34 = arith.truncf %30 : vector<8x128xf32> to vector<8x128xbf16>
    %cst_20 = arith.constant dense<0.000000e+00> : vector<8x128xf32>
    %35 = tpu.matmul %34, %31, %cst_20 {dimension_numbers = #tpu.dot_dimension_numbers<[1], [0], [0], [1], [0, 0, 1, 1], [], []>} : vector<8x128xbf16>, vector<128x128xbf16>, vector<8x128xf32> -> vector<8x128xf32>
    %cst_21 = arith.constant dense<0.000000e+00> : vector<128xf32>
    %36 = vector.multi_reduction <add>, %35, %cst_21 [0] : vector<8x128xf32> to vector<128xf32>
    %37 = vector.shape_cast %36 : vector<128xf32> to vector<1x128xf32>
    %38 = arith.mulf %35, %35 : vector<8x128xf32>
    %cst_22 = arith.constant dense<0.000000e+00> : vector<128xf32>
    %39 = vector.multi_reduction <add>, %38, %cst_22 [0] : vector<8x128xf32> to vector<128xf32>
    %40 = vector.shape_cast %39 : vector<128xf32> to vector<1x128xf32>
    %cst_23 = arith.constant 1.250000e-01 : f32
    %41 = vector.broadcast %cst_23 : f32 to vector<1x128xf32>
    %42 = arith.mulf %37, %41 : vector<1x128xf32>
    %cst_24 = arith.constant 1.250000e-01 : f32
    %43 = vector.broadcast %cst_24 : f32 to vector<1x128xf32>
    %44 = arith.mulf %40, %43 : vector<1x128xf32>
    %45 = arith.mulf %42, %42 : vector<1x128xf32>
    %46 = arith.subf %44, %45 : vector<1x128xf32>
    %cst_25 = arith.constant 0.000000e+00 : f32
    %47 = vector.broadcast %cst_25 : f32 to vector<1x128xf32>
    %48 = arith.maximumf %46, %47 : vector<1x128xf32>
    %cst_26 = arith.constant 9.99999974E-6 : f32
    %49 = vector.broadcast %cst_26 : f32 to vector<1x128xf32>
    %50 = arith.addf %48, %49 : vector<1x128xf32>
    %51 = math.rsqrt %50 : vector<1x128xf32>
    %52 = arith.mulf %32, %51 : vector<1x128xf32>
    %53 = arith.mulf %42, %52 : vector<1x128xf32>
    %54 = arith.subf %33, %53 : vector<1x128xf32>
    %55 = vector.broadcast %52 : vector<1x128xf32> to vector<8x128xf32>
    %56 = arith.mulf %35, %55 : vector<8x128xf32>
    %57 = vector.broadcast %54 : vector<1x128xf32> to vector<8x128xf32>
    %58 = arith.addf %56, %57 : vector<8x128xf32>
    %59 = arith.addf %58, %0 : vector<8x128xf32>
    %cst_27 = arith.constant 0.000000e+00 : f32
    %60 = vector.broadcast %cst_27 : f32 to vector<8x128xf32>
    %61 = arith.maximumf %59, %60 : vector<8x128xf32>
    %c0_28 = arith.constant 0 : index
    %c0_29 = arith.constant 0 : index
    %62 = vector.load %arg7[%c0_28, %c0_29] : memref<8x128xf32, #tpu.memory_space<vmem>>, vector<8x128xf32>
    tpu.vector_store %arg7[%c0_28, %c0_29], %61 {strides = array<i32>} : memref<8x128xf32, #tpu.memory_space<vmem>>, vector<8x128xf32>,
    return
  }
}

</mosaic_0001>

<bundles_post_ra>
// kernel: tpu_custom_call.1
= control target key start
LH: loop header
LB: loop body
LE: loop exit
PB: predicated region body
PF: predicated region fallthrough
CT: control target
= control target key end

     0   :  { %12 = vsyncpa [#allocation3], 0  ;;  %s641_s0 = inlined_call_operand.hbm [shape: f32[8,128], index: 0, kind: input, shape index: {}]   ;;  %s642_s1 = inlined_call_operand.hbm [shape: bf16[128,128], index: 1, kind: input, shape index: {}]   ;;  %s643_s2 = inlined_call_operand.vmem [shape: f32[1,128], index: 2, kind: input, shape index: {}]   ;;  %s644_s3 = inlined_call_operand.vmem [shape: f32[1,128], index: 3, kind: input, shape index: {}]   ;;  %s645_s4 = inlined_call_operand.hbm [shape: bf16[128,128], index: 4, kind: input, shape index: {}]   ;;  %s646_s5 = inlined_call_operand.vmem [shape: f32[1,128], index: 5, kind: input, shape index: {}]   ;;  %s647_s6 = inlined_call_operand.vmem [shape: f32[1,128], index: 6, kind: input, shape index: {}]   ;;  %s648_s7 = inlined_call_operand.hbm [shape: f32[8,128], index: 7, kind: output, shape index: {}]  }
   0x1   :  { %13 = vsyncpa [#allocation6], 0 }
   0x2   :  { %14 = vsyncpa [#allocation4], 0  ;;  %s564_s24 = smov [#allocation5]  }
   0x3   :  { %s30_s25 = sshll.u32 %s564_s24, 4  ;;  %s31_s25 = int_to_ptr.vmem [resolvable:$true] %s30_s25 }
   0x4   :  { %s486_s26 = scalar_lea.vmem %s31_s25, 1024  ;;  %p491_p1 = scmp.lt.s32.totalorder %s31_s25, %s31_s25 }
   0x5   :  { %p487_p0 = scmp.ne.s32.totalorder %s31_s25, %s486_s26  ;;  %p492_p2 = scmp.lt.s32.totalorder %s486_s26, %s486_s26 }
   0x7   :  { %p493_p3 = por %p492_p2, %p491_p1 }
   0x9   :  { %p494_p4 = pnand %p493_p3, %p487_p0 }
   0xb   :  { %497 = shalt.err (!%p494_p4)
}
   0xc   :  { %s565_s27 = smov 64   ;;  %s566_s28 = smov 4  }
   0xd   :  { %36 = dma.hbm_to_vmem [thread:$0]  %s642_s1, 1024, %s31_s25, [#allocation6], %s565_s27, %s565_s27, %s566_s28  }
   0xe   :  { %s567_s8 = smov [#allocation2]   ;;  %s568_s10 = smov [#allocation7]  }
   0xf   :  { %s21_s9 = sshll.u32 %s567_s8, 4  ;;  %s46_s11 = sshll.u32 %s568_s10, 4  ;;  %s22_s9 = int_to_ptr.vmem [resolvable:$true] %s21_s9  ;;  %s47_s11 = int_to_ptr.vmem [resolvable:$true] %s46_s11 }
  0x10   :  { %s506_s12 = scalar_lea.vmem %s22_s9, 128  ;;  %p511_p6 = scmp.lt.s32.totalorder %s22_s9, %s22_s9 }
  0x11   :  { %p507_p5 = scmp.ne.s32.totalorder %s22_s9, %s506_s12  ;;  %p512_p7 = scmp.lt.s32.totalorder %s506_s12, %s506_s12 }
  0x13   :  { %p513_p8 = por %p512_p7, %p511_p6 }
  0x15   :  { %p514_p9 = pnand %p513_p8, %p507_p5 }
  0x17   :  { %517 = shalt.err (!%p514_p9)
}
  0x18   :  { %24 = dma.hbm_to_vmem [thread:$0]  %s641_s0, 128, %s22_s9, [#allocation3]  }
  0x19   :  { %s526_s15 = scalar_lea.vmem %s47_s11, 1024  ;;  %p531_p11 = scmp.lt.s32.totalorder %s47_s11, %s47_s11 }
  0x1a   :  { %p527_p10 = scmp.ne.s32.totalorder %s47_s11, %s526_s15  ;;  %p532_p12 = scmp.lt.s32.totalorder %s526_s15, %s526_s15 }
  0x1c   :  { %p533_p13 = por %p532_p12, %p531_p11 }
  0x1e   :  { %p534_p0 = pnand %p533_p13, %p527_p10 }
  0x20   :  { %537 = shalt.err (!%p534_p0)
}
  0x21   :  { %52 = dma.hbm_to_vmem [thread:$0]  %s645_s4, 1024, %s47_s11, [#allocation6], %s565_s27, %s565_s27, %s566_s28  }
  0x22   :  { %558 = dma.done.wait [#allocation3], 128  }
  0x23   :  { %559 = vsyncadd [#allocation3], 4294967168 }
  0x24   :  { %560 = dma.done.wait [#allocation6], 2048  }
  0x25   :  { %561 = vsyncadd [#allocation6], 4294965248  ;;  %v569_v0 = vmov 0.0   ;;  %vm570_vm0 = vmmov 0   ;;  %v458_v1 = vld [vmem:[#allocation5 + $0x38] sm:$0xff]   ;;  %v459_v2 = vld [vmem:[#allocation5 + $0x30] sm:$0xff]   ;;  %v199_v42 = vlaneseq }
  0x26   :  { %410 = vmatprep.subr.bf16.mxu0 %v569_v0  ;;  %426 = vmatprep.mubr.msk.bf16.mxu0 %vm570_vm0, %v569_v0  ;;  %v460_v3 = vld [vmem:[#allocation5 + $0x28] sm:$0xff]   ;;  %v461_v4 = vld [vmem:[#allocation5 + $0x20] sm:$0xff]   ;;  %v462_v5 = vld [vmem:[#allocation5 + $0x18] sm:$0xff]   ;;  %s571_s21 = smov [#allocation8]  }
  0x27   :  { %430 = vmatprep.subr.bf16.mxu1 %v569_v0  ;;  %446 = vmatprep.mubr.msk.bf16.mxu1 %vm570_vm0, %v569_v0  ;;  %v463_v6 = vld [vmem:[#allocation5 + $0x10] sm:$0xff]   ;;  %v464_v7 = vld [vmem:[#allocation5 + $0x8] sm:$0xff]   ;;  %v465_v8 = vld [vmem:[#allocation5] sm:$0xff]   ;;  %v200_v43 = vshrl.u32 %v199_v42, 7  ;;  %s366_s22 = sshll.u32 %s571_s21, 4  ;;  %s367_s22 = int_to_ptr.vmem [resolvable:$true] %s366_s22 }
  0x28   :  { %411 = vmatpush3.bf16.msra.mxu0 %v458_v1  ;;  %v621_v9 = vld [vmem:[#allocation2] sm:$0xff]  ;;  %v467_v12 = vld [vmem:[#allocation7 + $0x30] sm:$0xff]   ;;  %v468_v13 = vld [vmem:[#allocation7 + $0x28] sm:$0xff]   ;;  %p543_p2 = scmp.lt.s32.totalorder %s367_s22, %s367_s22 }
  0x29   :  { %412 = vmatprep.subr.bf16.mxu0 %v569_v0  ;;  %v86_v10 = vpack.c.bf16 %v621_v9, %v621_v9  ;;  %v466_v11 = vld [vmem:[#allocation7 + $0x38] sm:$0xff]   ;;  %v469_v14 = vld [vmem:[#allocation7 + $0x20] sm:$0xff]   ;;  %v471_v16 = vld [vmem:[#allocation7 + $0x10] sm:$0xff]   ;;  %v201_v45 = vsub.s32 0, %v200_v43 }
  0x2a   :  { %431 = vmatpush3.bf16.msra.mxu1 %v466_v11  ;;  %v470_v15 = vld [vmem:[#allocation7 + $0x18] sm:$0xff]   ;;  %v472_v17 = vld [vmem:[#allocation7 + $0x8] sm:$0xff]   ;;  %v473_v18 = vld [vmem:[#allocation7] sm:$0xff]  }
  0x2b   :  { %432 = vmatprep.subr.bf16.mxu1 %v569_v0  ;;  %v84_v44 = vld [vmem:[%s643_s2] sm:$0x1] }
  0x2c   :  { %413 = vmatpush3.bf16.msra.mxu0 %v459_v2  ;;  %v85_v48 = vld [vmem:[%s644_s3] sm:$0x1] }
  0x2d   :  { %414 = vmatprep.subr.bf16.mxu0 %v569_v0 }
  0x2e   :  { %433 = vmatpush3.bf16.msra.mxu1 %v467_v12 }
  0x2f   :  { %434 = vmatprep.subr.bf16.mxu1 %v569_v0 }
  0x30   :  { %415 = vmatpush3.bf16.msra.mxu0 %v460_v3 }
  0x31   :  { %416 = vmatprep.subr.bf16.mxu0 %v569_v0 }
  0x32   :  { %435 = vmatpush3.bf16.msra.mxu1 %v468_v13 }
  0x33   :  { %436 = vmatprep.subr.bf16.mxu1 %v569_v0 }
  0x34   :  { %417 = vmatpush3.bf16.msra.mxu0 %v461_v4 }
  0x35   :  { %418 = vmatprep.subr.bf16.mxu0 %v569_v0 }
  0x36   :  { %437 = vmatpush3.bf16.msra.mxu1 %v469_v14 }
  0x37   :  { %438 = vmatprep.subr.bf16.mxu1 %v569_v0 }
  0x38   :  { %419 = vmatpush3.bf16.msra.mxu0 %v462_v5 }
  0x39   :  { %420 = vmatprep.subr.bf16.mxu0 %v569_v0 }
  0x3a   :  { %439 = vmatpush3.bf16.msra.mxu1 %v470_v15 }
  0x3b   :  { %440 = vmatprep.subr.bf16.mxu1 %v569_v0 }
  0x3c   :  { %421 = vmatpush3.bf16.msra.mxu0 %v463_v6 }
  0x3d   :  { %422 = vmatprep.subr.bf16.mxu0 %v569_v0 }
  0x3e   :  { %441 = vmatpush3.bf16.msra.mxu1 %v471_v16 }
  0x3f   :  { %442 = vmatprep.subr.bf16.mxu1 %v569_v0 }
  0x40   :  { %423 = vmatpush3.bf16.msra.mxu0 %v464_v7 }
  0x41   :  { %424 = vmatprep.subr.bf16.mxu0 %v569_v0 }
  0x42   :  { %443 = vmatpush3.bf16.msra.mxu1 %v472_v17  ;;  %v229_v17 = vld [vmem:[%s646_s5] sm:$0x1]  ;;  %s538_s5 = scalar_lea.vmem %s367_s22, 128 }
  0x43   :  { %444 = vmatprep.subr.bf16.mxu1 %v569_v0  ;;  %p539_p1 = scmp.ne.s32.totalorder %s367_s22, %s538_s5  ;;  %p544_p3 = scmp.lt.s32.totalorder %s538_s5, %s538_s5 }
  0x44   :  { %425 = vmatpush3.bf16.msra.mxu0 %v465_v8 }
  0x45   :  { %p545_p4 = por %p544_p3, %p543_p2 }
  0x46   :  { %445 = vmatpush3.bf16.msra.mxu1 %v473_v18 }
  0x47   :  { %427 = vmatmul.mubr.bf16.vlgmr.msra.gmra.mxu0 %v86_v10  ;;  %p546_p5 = pnand %p545_p4, %p539_p1 }
 0x107   :  { %v169_v19 = vpop.f32.mrf.mxu0 }
 0x108   :  { %v175_v20 = vrot.slane %v169_v19, 4  ;;  %v181_v21 = vmul.f32 %v169_v19, %v169_v19 }
 0x109   :  { %v428_v22 = vpop.f32.mrf.mxu0 }
 0x10a   :  { %v176_v23 = vadd.f32 %v175_v20, %v169_v19  ;;  %v182_v24 = vrot.slane %v181_v21, 4  ;;  %v230_v20 = vld [vmem:[%s647_s6] sm:$0x1] }
 0x10b   :  { %v172_v25 = vpop.f32.mrf.mxu0 }
 0x10c   :  { %v177_v26 = vrot.slane %v176_v23, 2  ;;  %v183_v27 = vadd.f32 %v182_v24, %v181_v21 }
 0x10d   :  { %v429_v28 = vpop.f32.mrf.mxu0 }
 0x10e   :  { %v178_v29 = vadd.f32 %v177_v26, %v176_v23  ;;  %v184_v30 = vrot.slane %v183_v27, 2 }
 0x110   :  { %v179_v31 = vrot.slane %v178_v29, 1  ;;  %v185_v32 = vadd.f32 %v184_v30, %v183_v27 }
 0x112   :  { %v180_v33 = vadd.f32 %v179_v31, %v178_v29  ;;  %v186_v34 = vrot.slane %v185_v32, 1 }
 0x114   :  { %v187_v35 = vadd.f32 %v186_v34, %v185_v32  ;;  %v188_v36 = vmul.f32 0.125, %v180_v33 }
 0x116   :  { %v189_v37 = vmul.f32 0.125, %v187_v35  ;;  %v190_v38 = vmul.f32 %v188_v36, %v188_v36 }
 0x118   :  { %v191_v39 = vsub.f32 %v189_v37, %v190_v38 }
 0x11a   :  { %v192_v40 = vmax.f32 %v191_v39, 0.0 }
 0x11c   :  { %v193_v41 = vadd.f32 1e-05, %v192_v40 }
 0x11e   :  { %474 = vrsqrt.f32 %v193_v41 }
 0x12b   :  { %v475_v46 = vpop.eup %474 }
 0x12c   :  { %v195_v47 = vmul.f32 %v475_v46, %v84_v44 }
 0x12e   :  { %v202_v49 = vrot.slane %v195_v47, %v201_v45  ;;  %v196_v50 = vmul.f32 %v195_v47, %v188_v36 }
 0x130   :  { %v197_v51 = vsub.f32 %v85_v48, %v196_v50  ;;  %v204_v52 = vmul.f32 %v202_v49, %v169_v19 }
 0x132   :  { %v209_v53 = vrot.slane %v197_v51, %v201_v45 }
 0x134   :  { %v211_v54 = vadd.f32 %v209_v53, %v204_v52 }
 0x136   :  { %v212_v55 = vmax.f32 %v211_v54, 0.0 }
 0x138   :  { %v231_v56 = vpack.c.bf16 %v212_v55, %v212_v55 }
 0x13a   :  { %447 = vmatmul.mubr.bf16.vlgmr.msra.gmra.mxu1 %v231_v56 }
 0x1fa   :  { %v314_v57 = vpop.f32.mrf.mxu1 }
 0x1fb   :  { %v320_v58 = vrot.slane %v314_v57, 4  ;;  %v326_v59 = vmul.f32 %v314_v57, %v314_v57 }
 0x1fc   :  { %v448_v60 = vpop.f32.mrf.mxu1 }
 0x1fd   :  { %v321_v61 = vadd.f32 %v320_v58, %v314_v57  ;;  %v327_v62 = vrot.slane %v326_v59, 4 }
 0x1fe   :  { %v317_v63 = vpop.f32.mrf.mxu1 }
 0x1ff   :  { %v322_v0 = vrot.slane %v321_v61, 2  ;;  %v328_v1 = vadd.f32 %v327_v62, %v326_v59 }
 0x200   :  { %v449_v2 = vpop.f32.mrf.mxu1 }
 0x201   :  { %v323_v3 = vadd.f32 %v322_v0, %v321_v61  ;;  %v329_v4 = vrot.slane %v328_v1, 2 }
 0x203   :  { %v324_v5 = vrot.slane %v323_v3, 1  ;;  %v330_v6 = vadd.f32 %v329_v4, %v328_v1 }
 0x205   :  { %v325_v7 = vadd.f32 %v324_v5, %v323_v3  ;;  %v331_v8 = vrot.slane %v330_v6, 1 }
 0x207   :  { %v332_v10 = vadd.f32 %v331_v8, %v330_v6  ;;  %v333_v11 = vmul.f32 0.125, %v325_v7 }
 0x209   :  { %v334_v12 = vmul.f32 0.125, %v332_v10  ;;  %v335_v13 = vmul.f32 %v333_v11, %v333_v11 }
 0x20b   :  { %v336_v14 = vsub.f32 %v334_v12, %v335_v13 }
 0x20d   :  { %v337_v15 = vmax.f32 %v336_v14, 0.0 }
 0x20f   :  { %v338_v16 = vadd.f32 1e-05, %v337_v15 }
 0x211   :  { %476 = vrsqrt.f32 %v338_v16 }
 0x21e   :  { %v477_v18 = vpop.eup %476 }
 0x21f   :  { %v340_v19 = vmul.f32 %v477_v18, %v229_v17 }
 0x221   :  { %v341_v21 = vmul.f32 %v340_v19, %v333_v11  ;;  %v347_v22 = vrot.slane %v340_v19, %v201_v45 }
 0x223   :  { %v342_v23 = vsub.f32 %v230_v20, %v341_v21  ;;  %v349_v24 = vmul.f32 %v347_v22, %v314_v57 }
 0x225   :  { %v354_v25 = vrot.slane %v342_v23, %v201_v45 }
 0x227   :  { %v356_v26 = vadd.f32 %v354_v25, %v349_v24 }
 0x229   :  { %v357_v27 = vadd.f32 %v356_v26, %v621_v9 }
 0x22b   :  { %v358_v28 = vmax.f32 %v357_v27, 0.0 }
 0x22d   :  { %359 = vst [vmem:[#allocation8] sm:$0xff] %v358_v28 }
 0x22e   :  { %549 = shalt.err (!%p546_p5)
}
 0x22f   :  { %369 = dma.vmem_to_hbm [thread:$0]  %s367_s22, 128, %s648_s7, [#allocation4]  }
 0x230   :  { %562 = dma.done.wait [#allocation4], 128  }
 0x231   :  { %563 = vsyncadd [#allocation4], 4294967168 }
 0x232   :  { %373 = vsyncpa [#allocation3], 1 }
 0x233   :  { %374 = vsyncpa [#allocation6], 1 }
 0x234   :  { %375 = vsyncpa [#allocation4], 1 }

</bundles_post_ra>
